<compile_context>
chip_gen: v7x
topology: tpu7x:2x2x1
jax: 0.10.0
libtpu: 0.0.40
codegen_flags: <defaults>
</compile_context>

<pallas_src>
import functools

import numpy as np
import jax
import jax.numpy as jnp
from jax import lax
from jax.experimental import pallas as pl
from jax.experimental.pallas import tpu as pltpu

LN_EPS = 1e-5


def _critic_kernel(has_ac, *refs):
    """One batch tile, all ensemble members fused via folded/block weights.

      h   = [state | ac] @ W0_folded + b0          (wide MXU matmul, K split)
      mu  = h @ M_avg                              (per-member mean, broadcast, MXU)
      var = ((h - mu)^2) @ M_avg                   (two-pass variance, MXU)
      hn  = (h - mu) * gamma * rsqrt(var + eps) + beta
      h2  = relu(tanh(hn) @ W1_blockdiag + b1)
      q   = h2 @ W2_block + b2                     -> (TILE_B, E)
    """
    if has_ac:
        (s_ref, a_ref, w0s_ref, w0a_ref, b0_ref, mavg_ref, g_ref, beta_ref,
         w1_ref, b1_ref, w2_ref, b2_ref, o_ref) = refs
    else:
        (s_ref, w0s_ref, b0_ref, mavg_ref, g_ref, beta_ref,
         w1_ref, b1_ref, w2_ref, b2_ref, o_ref) = refs

    # First Linear for all members at once; [state|ac] concat done via K-split.
    h = jnp.dot(s_ref[...], w0s_ref[...], preferred_element_type=jnp.float32)
    if has_ac:
        h = h + jnp.dot(a_ref[...], w0a_ref[...],
                        preferred_element_type=jnp.float32)
    h = h + b0_ref[...]                                        # (TB, E*H0)

    # LayerNorm: per-member stats via the block-averaging matrix (MXU), two-pass.
    mavg = mavg_ref[...]
    mu = jnp.dot(h, mavg, preferred_element_type=jnp.float32)   # (TB, E*H0)
    d = h - mu
    var = jnp.dot(d * d, mavg, preferred_element_type=jnp.float32)
    hn = d * (g_ref[...] * lax.rsqrt(var + LN_EPS)) + beta_ref[...]

    # Tanh -> hidden Linear (block-diagonal across members) -> ReLU.
    t = jnp.tanh(hn)
    h2 = jnp.dot(t, w1_ref[...], preferred_element_type=jnp.float32) + b1_ref[...]
    h2 = jnp.maximum(h2, 0.0)                                   # (TB, E*H1)

    # Output Linear for all members: (TB, E*H1) @ (E*H1, E).
    o_ref[...] = (jnp.dot(h2, w2_ref[...], preferred_element_type=jnp.float32)
                  + b2_ref[...])


def fold_params(params, state_dim):
    """One-time layout transform of the natural per-member parameters."""
    W0, b0, g, beta, W1, b1, W2, b2 = params
    E, D_in, H0 = W0.shape
    H1 = W1.shape[-1]

    # (E, D_in, H0) -> (D_in, E*H0), split along K into state / ac parts.
    W0f = jnp.transpose(W0, (1, 0, 2)).reshape(D_in, E * H0)
    W0s, W0a = W0f[:state_dim], W0f[state_dim:]
    b0f = b0.reshape(1, E * H0)

    # Block-averaging matrix: mu = h @ M_avg gives each member's mean,
    # already broadcast across that member's H0 lanes.
    m_avg = jnp.kron(jnp.eye(E, dtype=jnp.float32),
                     jnp.full((H0, H0), 1.0 / H0, jnp.float32))

    gf = g.reshape(1, E * H0)
    betaf = beta.reshape(1, E * H0)

    # Block-diagonal hidden layer and block output layer (no cross-member leakage).
    W1blk = jnp.zeros((E * H0, E * H1), jnp.float32)
    W2blk = jnp.zeros((E * H1, E), jnp.float32)
    for e in range(E):
        W1blk = W1blk.at[e * H0:(e + 1) * H0, e * H1:(e + 1) * H1].set(W1[e])
        W2blk = W2blk.at[e * H1:(e + 1) * H1, e].set(W2[e, :, 0])
    b1f = b1.reshape(1, E * H1)
    b2f = b2.reshape(1, E)

    return (W0s, W0a, b0f, m_avg, gf, betaf, W1blk, b1f, W2blk, b2f)


@functools.partial(jax.jit, static_argnames=("ensemble", "tile_b"))
def critic_forward(state, ac, folded_params, ensemble, tile_b=None):
    """Returns (B,) if ensemble == 1 else the stacked (B, E) array of Q-values.

    (The PyTorch module returns a Python list of per-member tensors; callers
    here index q_all[:, e] instead.)
    """
    (W0s, W0a, b0f, m_avg, gf, betaf, W1blk, b1f, W2blk, b2f) = folded_params
    E = b2f.shape[-1]
    assert E == ensemble
    has_ac = ac is not None

    state = state.astype(jnp.float32)
    if has_ac:
        ac = ac.astype(jnp.float32)
    B = state.shape[0]

    # Batch tile: multiple of 8, capped at 1024 (VMEM-safe on v5e/v6e/v7x).
    if tile_b is None:
        tile_b = 1024 if B >= 1024 else max(8, -(-B // 8) * 8)
    b_pad = -(-B // tile_b) * tile_b
    if b_pad != B:
        state = jnp.pad(state, ((0, b_pad - B), (0, 0)))
        if has_ac:
            ac = jnp.pad(ac, ((0, b_pad - B), (0, 0)))

    def row_spec(d):
        return pl.BlockSpec((tile_b, d), lambda i: (i, 0))

    def const_spec(w):  # full-array block, constant index -> VMEM resident
        return pl.BlockSpec(w.shape, lambda i: (0, 0))

    weights = (([W0s, W0a] if has_ac else [W0s])
               + [b0f, m_avg, gf, betaf, W1blk, b1f, W2blk, b2f])
    operands = ([state, ac] if has_ac else [state]) + weights
    in_specs = ([row_spec(state.shape[1])]
                + ([row_spec(ac.shape[1])] if has_ac else [])
                + [const_spec(w) for w in weights])

    def kernel_fn(*refs):
        return _critic_kernel(has_ac, *refs)

    q_all = pl.pallas_call(
        kernel_fn,
        out_shape=jax.ShapeDtypeStruct((b_pad, E), jnp.float32),
        grid=(b_pad // tile_b,),
        in_specs=in_specs,
        out_specs=pl.BlockSpec((tile_b, E), lambda i: (i, 0)),
        compiler_params=pltpu.CompilerParams(
            dimension_semantics=("parallel",)),
    )(*operands)

    q_all = q_all[:B]
    return q_all[:, 0] if ensemble == 1 else q_all


def critic_reference(state, ac, params, ensemble):
    """Pure-JAX reference mirroring the PyTorch module (two-pass LayerNorm)."""
    x = state if ac is None else jnp.concatenate([state, ac], axis=-1)
    x = x.astype(jnp.float32)
    W0, b0, g, beta, W1, b1, W2, b2 = params
    qs = []
    for e in range(ensemble):
        h = x @ W0[e] + b0[e]
        mu = h.mean(-1, keepdims=True)
        var = ((h - mu) ** 2).mean(-1, keepdims=True)
        h = (h - mu) / jnp.sqrt(var + LN_EPS)
        h = h * g[e] + beta[e]
        h = jnp.tanh(h)
        h = jnp.maximum(h @ W1[e] + b1[e], 0.0)
        q = (h @ W2[e] + b2[e])[:, 0]
        qs.append(q)
    return qs[0] if ensemble == 1 else qs


def init_params(key, ensemble, input_dim, hidden_dims):
    """Deterministic synthetic init. hidden_dims = [h0, h1]."""
    h0, h1 = hidden_dims
    ks = jax.random.split(key, 8)
    f32 = jnp.float32
    W0 = jax.random.normal(ks[0], (ensemble, input_dim, h0), f32) * (1.0 / np.sqrt(input_dim))
    b0 = jax.random.normal(ks[1], (ensemble, h0), f32) * 0.01
    gamma = jnp.ones((ensemble, h0), f32)
    beta = jnp.zeros((ensemble, h0), f32)
    W1 = jax.random.normal(ks[2], (ensemble, h0, h1), f32) * (1.0 / np.sqrt(h0))
    b1 = jax.random.normal(ks[3], (ensemble, h1), f32) * 0.01
    # small_weight=True on the final layer of the MLP.
    W2 = jax.random.normal(ks[4], (ensemble, h1, 1), f32) * 1e-2
    b2 = jnp.zeros((ensemble, 1), f32)
    return (W0, b0, gamma, beta, W1, b1, W2, b2)


if __name__ == "__main__":
    key = jax.random.PRNGKey(0)
    k_s, k_a, k_p, k_p2, k_s2 = jax.random.split(key, 5)

    B = 8
    state_dim, ac_dim = 24, 8
    input_dim = state_dim + ac_dim            # concat([state, ac], dim=-1)
    hidden_dims = [32, 32]
    ensemble = 2

    state = jax.random.normal(k_s, (B, state_dim), jnp.float32)
    ac = jax.random.normal(k_a, (B, ac_dim), jnp.float32)
    params = init_params(k_p, ensemble, input_dim, hidden_dims)
    folded = fold_params(params, state_dim)   # one-time layout transform

    # 1) Small batch, single-tile grid.
    q = jax.block_until_ready(critic_forward(state, ac, folded, ensemble))
    q_ref = critic_reference(state, ac, params, ensemble)
    for e in range(ensemble):
        np.testing.assert_allclose(np.asarray(q[:, e]), np.asarray(q_ref[e]),
                                   rtol=1e-5, atol=1e-5)

    # 2) Multi-tile grid + row-padding path (forced tile_b=16, B=40 -> 3 tiles).
    B2 = 40
    state2 = jax.random.normal(k_s2, (B2, state_dim), jnp.float32)
    ac2 = jax.random.normal(k_a, (B2, ac_dim), jnp.float32)
    q2 = jax.block_until_ready(critic_forward(state2, ac2, folded, ensemble, tile_b=16))
    q2_ref = critic_reference(state2, ac2, params, ensemble)
    for e in range(ensemble):
        np.testing.assert_allclose(np.asarray(q2[:, e]), np.asarray(q2_ref[e]),
                                   rtol=1e-5, atol=1e-5)

    # 3) ac=None path (module allows forward(state) when input_dim == state_dim).
    params_s = init_params(k_p2, ensemble, state_dim, hidden_dims)
    folded_s = fold_params(params_s, state_dim)
    q3 = jax.block_until_ready(critic_forward(state, None, folded_s, ensemble))
    q3_ref = critic_reference(state, None, params_s, ensemble)
    for e in range(ensemble):
        np.testing.assert_allclose(np.asarray(q3[:, e]), np.asarray(q3_ref[e]),
                                   rtol=1e-5, atol=1e-5)

    print("KERNEL_OK")
</pallas_src>

<mosaic_0001>
module attributes {stable_mosaic.version = 11 : i64} {
  func.func @kernel_fn(%arg0: i32, %arg1: memref<8x24xf32, #tpu.memory_space<vmem>>, %arg2: memref<8x8xf32, #tpu.memory_space<vmem>>, %arg3: memref<24x64xf32, #tpu.memory_space<vmem>>, %arg4: memref<8x64xf32, #tpu.memory_space<vmem>>, %arg5: memref<1x64xf32, #tpu.memory_space<vmem>>, %arg6: memref<64x64xf32, #tpu.memory_space<vmem>>, %arg7: memref<1x64xf32, #tpu.memory_space<vmem>>, %arg8: memref<1x64xf32, #tpu.memory_space<vmem>>, %arg9: memref<64x64xf32, #tpu.memory_space<vmem>>, %arg10: memref<1x64xf32, #tpu.memory_space<vmem>>, %arg11: memref<64x2xf32, #tpu.memory_space<vmem>>, %arg12: memref<1x2xf32, #tpu.memory_space<vmem>>, %arg13: memref<8x2xf32, #tpu.memory_space<vmem>>) attributes {dimension_semantics = [#tpu.dimension_semantics<parallel>], iteration_bounds = array<i64: 1>, scalar_prefetch = 0 : i64, scratch_operands = 0 : i64, tpu.core_type = #tpu.core_type<tc>, window_params = [{transform_indices = @transform_0, window_bounds = array<i64: 8, 24>}, {transform_indices = @transform_1, window_bounds = array<i64: 8, 8>}, {pipeline_mode = #tpu.pipeline_mode<synchronous>, transform_indices = @transform_2, window_bounds = array<i64: 24, 64>}, {pipeline_mode = #tpu.pipeline_mode<synchronous>, transform_indices = @transform_3, window_bounds = array<i64: 8, 64>}, {pipeline_mode = #tpu.pipeline_mode<synchronous>, transform_indices = @transform_4, window_bounds = array<i64: 1, 64>}, {pipeline_mode = #tpu.pipeline_mode<synchronous>, transform_indices = @transform_5, window_bounds = array<i64: 64, 64>}, {pipeline_mode = #tpu.pipeline_mode<synchronous>, transform_indices = @transform_6, window_bounds = array<i64: 1, 64>}, {pipeline_mode = #tpu.pipeline_mode<synchronous>, transform_indices = @transform_7, window_bounds = array<i64: 1, 64>}, {pipeline_mode = #tpu.pipeline_mode<synchronous>, transform_indices = @transform_8, window_bounds = array<i64: 64, 64>}, {pipeline_mode = #tpu.pipeline_mode<synchronous>, transform_indices = @transform_9, window_bounds = array<i64: 1, 64>}, {pipeline_mode = #tpu.pipeline_mode<synchronous>, transform_indices = @transform_10, window_bounds = array<i64: 64, 2>}, {pipeline_mode = #tpu.pipeline_mode<synchronous>, transform_indices = @transform_11, window_bounds = array<i64: 1, 2>}, {transform_indices = @transform_12, window_bounds = array<i64: 8, 2>}]} {
    %c0 = arith.constant 0 : index
    %c0_0 = arith.constant 0 : index
    %0 = vector.load %arg1[%c0, %c0_0] : memref<8x24xf32, #tpu.memory_space<vmem>>, vector<8x24xf32>
    %c0_1 = arith.constant 0 : index
    %c0_2 = arith.constant 0 : index
    %1 = vector.load %arg3[%c0_1, %c0_2] : memref<24x64xf32, #tpu.memory_space<vmem>>, vector<24x64xf32>
    %cst = arith.constant dense<0.000000e+00> : vector<8x64xf32>
    %2 = tpu.matmul %0, %1, %cst {dimension_numbers = #tpu.dot_dimension_numbers<[1], [0], [0], [1], [0, 0, 1, 1], [], []>} : vector<8x24xf32>, vector<24x64xf32>, vector<8x64xf32> -> vector<8x64xf32>
    %c0_3 = arith.constant 0 : index
    %c0_4 = arith.constant 0 : index
    %3 = vector.load %arg2[%c0_3, %c0_4] : memref<8x8xf32, #tpu.memory_space<vmem>>, vector<8x8xf32>
    %c0_5 = arith.constant 0 : index
    %c0_6 = arith.constant 0 : index
    %4 = vector.load %arg4[%c0_5, %c0_6] : memref<8x64xf32, #tpu.memory_space<vmem>>, vector<8x64xf32>
    %cst_7 = arith.constant dense<0.000000e+00> : vector<8x64xf32>
    %5 = tpu.matmul %3, %4, %cst_7 {dimension_numbers = #tpu.dot_dimension_numbers<[1], [0], [0], [1], [0, 0, 1, 1], [], []>} : vector<8x8xf32>, vector<8x64xf32>, vector<8x64xf32> -> vector<8x64xf32>
    %6 = arith.addf %2, %5 : vector<8x64xf32>
    %c0_8 = arith.constant 0 : index
    %c0_9 = arith.constant 0 : index
    %7 = vector.load %arg5[%c0_8, %c0_9] : memref<1x64xf32, #tpu.memory_space<vmem>>, vector<1x64xf32>
    %8 = vector.broadcast %7 : vector<1x64xf32> to vector<8x64xf32>
    %9 = arith.addf %6, %8 : vector<8x64xf32>
    %c0_10 = arith.constant 0 : index
    %c0_11 = arith.constant 0 : index
    %10 = vector.load %arg6[%c0_10, %c0_11] : memref<64x64xf32, #tpu.memory_space<vmem>>, vector<64x64xf32>
    %cst_12 = arith.constant dense<0.000000e+00> : vector<8x64xf32>
    %11 = tpu.matmul %9, %10, %cst_12 {dimension_numbers = #tpu.dot_dimension_numbers<[1], [0], [0], [1], [0, 0, 1, 1], [], []>} : vector<8x64xf32>, vector<64x64xf32>, vector<8x64xf32> -> vector<8x64xf32>
    %12 = arith.subf %9, %11 : vector<8x64xf32>
    %13 = arith.mulf %12, %12 : vector<8x64xf32>
    %cst_13 = arith.constant dense<0.000000e+00> : vector<8x64xf32>
    %14 = tpu.matmul %13, %10, %cst_13 {dimension_numbers = #tpu.dot_dimension_numbers<[1], [0], [0], [1], [0, 0, 1, 1], [], []>} : vector<8x64xf32>, vector<64x64xf32>, vector<8x64xf32> -> vector<8x64xf32>
    %c0_14 = arith.constant 0 : index
    %c0_15 = arith.constant 0 : index
    %15 = vector.load %arg7[%c0_14, %c0_15] : memref<1x64xf32, #tpu.memory_space<vmem>>, vector<1x64xf32>
    %cst_16 = arith.constant 9.99999974E-6 : f32
    %16 = vector.broadcast %cst_16 : f32 to vector<8x64xf32>
    %17 = arith.addf %14, %16 : vector<8x64xf32>
    %18 = math.rsqrt %17 : vector<8x64xf32>
    %19 = vector.broadcast %15 : vector<1x64xf32> to vector<8x64xf32>
    %20 = arith.mulf %19, %18 : vector<8x64xf32>
    %21 = arith.mulf %12, %20 : vector<8x64xf32>
    %c0_17 = arith.constant 0 : index
    %c0_18 = arith.constant 0 : index
    %22 = vector.load %arg8[%c0_17, %c0_18] : memref<1x64xf32, #tpu.memory_space<vmem>>, vector<1x64xf32>
    %23 = vector.broadcast %22 : vector<1x64xf32> to vector<8x64xf32>
    %24 = arith.addf %21, %23 : vector<8x64xf32>
    %25 = math.tanh %24 : vector<8x64xf32>
    %c0_19 = arith.constant 0 : index
    %c0_20 = arith.constant 0 : index
    %26 = vector.load %arg9[%c0_19, %c0_20] : memref<64x64xf32, #tpu.memory_space<vmem>>, vector<64x64xf32>
    %cst_21 = arith.constant dense<0.000000e+00> : vector<8x64xf32>
    %27 = tpu.matmul %25, %26, %cst_21 {dimension_numbers = #tpu.dot_dimension_numbers<[1], [0], [0], [1], [0, 0, 1, 1], [], []>} : vector<8x64xf32>, vector<64x64xf32>, vector<8x64xf32> -> vector<8x64xf32>
    %c0_22 = arith.constant 0 : index
    %c0_23 = arith.constant 0 : index
    %28 = vector.load %arg10[%c0_22, %c0_23] : memref<1x64xf32, #tpu.memory_space<vmem>>, vector<1x64xf32>
    %29 = vector.broadcast %28 : vector<1x64xf32> to vector<8x64xf32>
    %30 = arith.addf %27, %29 : vector<8x64xf32>
    %cst_24 = arith.constant 0.000000e+00 : f32
    %31 = vector.broadcast %cst_24 : f32 to vector<8x64xf32>
    %32 = arith.maximumf %30, %31 : vector<8x64xf32>
    %c0_25 = arith.constant 0 : index
    %c0_26 = arith.constant 0 : index
    %33 = vector.load %arg11[%c0_25, %c0_26] : memref<64x2xf32, #tpu.memory_space<vmem>>, vector<64x2xf32>
    %cst_27 = arith.constant dense<0.000000e+00> : vector<8x2xf32>
    %34 = tpu.matmul %32, %33, %cst_27 {dimension_numbers = #tpu.dot_dimension_numbers<[1], [0], [0], [1], [0, 0, 1, 1], [], []>} : vector<8x64xf32>, vector<64x2xf32>, vector<8x2xf32> -> vector<8x2xf32>
    %c0_28 = arith.constant 0 : index
    %c0_29 = arith.constant 0 : index
    %35 = vector.load %arg12[%c0_28, %c0_29] : memref<1x2xf32, #tpu.memory_space<vmem>>, vector<1x2xf32>
    %36 = vector.broadcast %35 : vector<1x2xf32> to vector<8x2xf32>
    %37 = arith.addf %34, %36 : vector<8x2xf32>
    %c0_30 = arith.constant 0 : index
    %c0_31 = arith.constant 0 : index
    %38 = vector.load %arg13[%c0_30, %c0_31] : memref<8x2xf32, #tpu.memory_space<vmem>>, vector<8x2xf32>
    tpu.vector_store %arg13[%c0_30, %c0_31], %37 {strides = array<i32>} : memref<8x2xf32, #tpu.memory_space<vmem>>, vector<8x2xf32>,
    return
  }
  func.func @transform_0(%arg0: i32) -> (i32, i32) {
    %c0_i32 = arith.constant 0 : i32
    %c0_i32_0 = arith.constant 0 : i32
    return %arg0, %c0_i32 : i32, i32
  }
  func.func @transform_1(%arg0: i32) -> (i32, i32) {
    %c0_i32 = arith.constant 0 : i32
    %c0_i32_0 = arith.constant 0 : i32
    return %arg0, %c0_i32 : i32, i32
  }
  func.func @transform_2(%arg0: i32) -> (i32, i32) {
    %c0_i32 = arith.constant 0 : i32
    %c0_i32_0 = arith.constant 0 : i32
    %c0_i32_1 = arith.constant 0 : i32
    return %c0_i32, %c0_i32_0 : i32, i32
  }
  func.func @transform_3(%arg0: i32) -> (i32, i32) {
    %c0_i32 = arith.constant 0 : i32
    %c0_i32_0 = arith.constant 0 : i32
    %c0_i32_1 = arith.constant 0 : i32
    return %c0_i32, %c0_i32_0 : i32, i32
  }
  func.func @transform_4(%arg0: i32) -> (i32, i32) {
    %c0_i32 = arith.constant 0 : i32
    %c0_i32_0 = arith.constant 0 : i32
    %c0_i32_1 = arith.constant 0 : i32
    return %c0_i32, %c0_i32_0 : i32, i32
  }
  func.func @transform_5(%arg0: i32) -> (i32, i32) {
    %c0_i32 = arith.constant 0 : i32
    %c0_i32_0 = arith.constant 0 : i32
    %c0_i32_1 = arith.constant 0 : i32
    return %c0_i32, %c0_i32_0 : i32, i32
  }
  func.func @transform_6(%arg0: i32) -> (i32, i32) {
    %c0_i32 = arith.constant 0 : i32
    %c0_i32_0 = arith.constant 0 : i32
    %c0_i32_1 = arith.constant 0 : i32
    return %c0_i32, %c0_i32_0 : i32, i32
  }
  func.func @transform_7(%arg0: i32) -> (i32, i32) {
    %c0_i32 = arith.constant 0 : i32
    %c0_i32_0 = arith.constant 0 : i32
    %c0_i32_1 = arith.constant 0 : i32
    return %c0_i32, %c0_i32_0 : i32, i32
  }
  func.func @transform_8(%arg0: i32) -> (i32, i32) {
    %c0_i32 = arith.constant 0 : i32
    %c0_i32_0 = arith.constant 0 : i32
    %c0_i32_1 = arith.constant 0 : i32
    return %c0_i32, %c0_i32_0 : i32, i32
  }
  func.func @transform_9(%arg0: i32) -> (i32, i32) {
    %c0_i32 = arith.constant 0 : i32
    %c0_i32_0 = arith.constant 0 : i32
    %c0_i32_1 = arith.constant 0 : i32
    return %c0_i32, %c0_i32_0 : i32, i32
  }
  func.func @transform_10(%arg0: i32) -> (i32, i32) {
    %c0_i32 = arith.constant 0 : i32
    %c0_i32_0 = arith.constant 0 : i32
    %c0_i32_1 = arith.constant 0 : i32
    return %c0_i32, %c0_i32_0 : i32, i32
  }
  func.func @transform_11(%arg0: i32) -> (i32, i32) {
    %c0_i32 = arith.constant 0 : i32
    %c0_i32_0 = arith.constant 0 : i32
    %c0_i32_1 = arith.constant 0 : i32
    return %c0_i32, %c0_i32_0 : i32, i32
  }
  func.func @transform_12(%arg0: i32) -> (i32, i32) {
    %c0_i32 = arith.constant 0 : i32
    %c0_i32_0 = arith.constant 0 : i32
    return %arg0, %c0_i32 : i32, i32
  }
}

</mosaic_0001>

<bundles_post_ra>
// kernel: critic_forward.1
= control target key start
LH: loop header
LB: loop body
LE: loop exit
PB: predicated region body
PF: predicated region fallthrough
CT: control target
= control target key end

     0   :  { %17 = vsyncpa [#allocation3], 0  ;;  %s1102_s0 = inlined_call_operand.vmem [shape: f32[8,24], index: 0, kind: input, shape index: {}]   ;;  %s1103_s1 = inlined_call_operand.vmem [shape: f32[8,8], index: 1, kind: input, shape index: {}]   ;;  %s1104_s2 = inlined_call_operand.hbm [shape: f32[24,64], index: 2, kind: input, shape index: {}]   ;;  %s1105_s3 = inlined_call_operand.hbm [shape: f32[8,64], index: 3, kind: input, shape index: {}]   ;;  %s1106_s4 = inlined_call_operand.vmem [shape: f32[1,64], index: 4, kind: input, shape index: {}]   ;;  %s1107_s5 = inlined_call_operand.vmem [shape: f32[64,64], index: 5, kind: input, shape index: {}]   ;;  %s1108_s6 = inlined_call_operand.vmem [shape: f32[1,64], index: 6, kind: input, shape index: {}]   ;;  %s1109_s7 = inlined_call_operand.vmem [shape: f32[1,64], index: 7, kind: input, shape index: {}]   ;;  %s1110_s8 = inlined_call_operand.hbm [shape: f32[64,64], index: 8, kind: input, shape index: {}]   ;;  %s1111_s9 = inlined_call_operand.vmem [shape: f32[1,64], index: 9, kind: input, shape index: {}]   ;;  %s1112_s10 = inlined_call_operand.vmem [shape: f32[64,2], index: 10, kind: input, shape index: {}]   ;;  %s1113_s11 = inlined_call_operand.vmem [shape: f32[1,2], index: 11, kind: input, shape index: {}]   ;;  %s1114_s12 = inlined_call_operand.vmem [shape: f32[8,2], index: 12, kind: output, shape index: {}]  }
   0x1   :  { %18 = vsyncpa [#allocation5], 0  ;;  %s879_s21 = smov [#allocation4]   ;;  %s880_s23 = smov [#allocation2]  }
   0x2   :  { %s41_s22 = sshll.u32 %s879_s21, 4  ;;  %s28_s24 = sshll.u32 %s880_s23, 4  ;;  %s42_s22 = int_to_ptr.vmem [resolvable:$true] %s41_s22  ;;  %s952_s24 = int_to_ptr.vmem [resolvable:$true] %s28_s24 }
   0x3   :  { %s809_s27 = scalar_lea.hbm %s1105_s3, 128 }
   0x4   :  { %p810_p0 = scmp.ne.s32.totalorder %s1105_s3, %s809_s27  ;;  %p813_p1 = scmp.lt.u32.totalorder %s809_s27, %s1105_s3 }
   0x6   :  { %p815_p2 = pnand %p813_p1, %p810_p0 }
   0x8   :  { %818 = shalt.err (!%p815_p2)
}
   0x9   :  { %s819_s14 = scalar_lea.vmem %s42_s22, 128  ;;  %p824_p4 = scmp.lt.s32.totalorder %s42_s22, %s42_s22 }
   0xa   :  { %p820_p3 = scmp.ne.s32.totalorder %s42_s22, %s819_s14  ;;  %p825_p5 = scmp.lt.s32.totalorder %s819_s14, %s819_s14 }
   0xc   :  { %p826_p6 = por %p825_p5, %p824_p4 }
   0xe   :  { %p827_p7 = pnand %p826_p6, %p820_p3 }
  0x10   :  { %830 = shalt.err (!%p827_p7)
}
  0x11   :  { %44 = dma.hbm_to_vmem [thread:$0]  %s1105_s3, 128, %s42_s22, [#allocation5]  }
  0x12   :  { %s831_s19 = scalar_lea.hbm %s1104_s2, 384 }
  0x13   :  { %p832_p8 = scmp.ne.s32.totalorder %s1104_s2, %s831_s19  ;;  %p835_p9 = scmp.lt.u32.totalorder %s831_s19, %s1104_s2 }
  0x15   :  { %p837_p10 = pnand %p835_p9, %p832_p8 }
  0x17   :  { %840 = shalt.err (!%p837_p10)
}
  0x18   :  { %s841_s26 = scalar_lea.vmem %s952_s24, 384  ;;  %p846_p12 = scmp.lt.s32.totalorder %s952_s24, %s952_s24 }
  0x19   :  { %p842_p11 = scmp.ne.s32.totalorder %s952_s24, %s841_s26  ;;  %p847_p13 = scmp.lt.s32.totalorder %s841_s26, %s841_s26 }
  0x1b   :  { %p848_p0 = por %p847_p13, %p846_p12 }
  0x1d   :  { %p849_p1 = pnand %p848_p0, %p842_p11 }
  0x1f   :  { %852 = shalt.err (!%p849_p1)
}
  0x20   :  { %s881_s3 = smov 128   ;;  %s882_s22 = smov 8  }
  0x21   :  { %34 = dma.hbm_to_vmem [thread:$0]  %s1104_s2, 384, %s952_s24, [#allocation3], %s881_s3, %s881_s3, %s882_s22  }
  0x22   :  { %s883_s29 = smov [#allocation6]   ;;  %s853_s15 = scalar_lea.hbm %s1110_s8, 1024 }
  0x23   :  { %s58_s30 = sshll.u32 %s883_s29, 4  ;;  %p854_p2 = scmp.ne.s32.totalorder %s1110_s8, %s853_s15  ;;  %s59_s30 = int_to_ptr.vmem [resolvable:$true] %s58_s30 }
  0x24   :  { %p857_p3 = scmp.lt.u32.totalorder %s853_s15, %s1110_s8 }
  0x26   :  { %p859_p4 = pnand %p857_p3, %p854_p2 }
  0x28   :  { %862 = shalt.err (!%p859_p4)
}
  0x29   :  { %s863_s20 = scalar_lea.vmem %s59_s30, 1024  ;;  %p868_p6 = scmp.lt.s32.totalorder %s59_s30, %s59_s30 }
  0x2a   :  { %p864_p5 = scmp.ne.s32.totalorder %s59_s30, %s863_s20  ;;  %p869_p7 = scmp.lt.s32.totalorder %s863_s20, %s863_s20 }
  0x2c   :  { %p870_p8 = por %p869_p7, %p868_p6 }
  0x2e   :  { %p871_p9 = pnand %p870_p8, %p864_p5 }
  0x30   :  { %874 = shalt.err (!%p871_p9)
}
  0x31   :  { %64 = dma.hbm_to_vmem [thread:$0]  %s1110_s8, 1024, %s59_s30, [#allocation5], %s881_s3, %s881_s3, %s882_s22  }
  0x32   :  { %875 = dma.done.wait [#allocation3], 384  }
  0x33   :  { %876 = vsyncadd [#allocation3], 4294966912 }
  0x34   :  { %877 = dma.done.wait [#allocation5], 1152  }
  0x35   :  { %878 = vsyncadd [#allocation5], 4294966144  ;;  %v884_v0 = vmov 0.0|0.0   ;;  %v885_v1 = vmov 0.0   ;;  %vm886_vm0 = vmmov 0   ;;  %vm86_vm1 = vcmask 64512  }
  0x36   :  { %746 = vmatprep.subr.bf16.mxu1 %v884_v0  ;;  %656 = vmatprep.subr.mxu0 %v885_v1  ;;  %v81_v2 = vld [vmem:[#allocation2] sm:$0xff]  ;;  %v82_v3 = vld [vmem:[#allocation2 + $0x8] sm:$0xff]  ;;  %v85_v4 = vld [vmem:[#allocation4] sm:$0xff]  ;;  %vm160_vm2 = vcmask 195584   ;;  %vm250_vm3 = vcmask 523264   ;;  %vm595_vm4 = vcmask 15360  }
  0x37   :  { %658 = vmatprep.mubr.msk.f32.mxu0 %vm886_vm0, %v885_v1  ;;  %667 = vmatprep.mubr.msk.f32.mxu1 %vm886_vm0, %v885_v1  ;;  %v747_v5 = vpack.c.bf16 %v82_v3, %v81_v2  ;;  %v84_v6 = vld [vmem:[%s1103_s1] sm:$0xff]  ;;  %v243_v8 = vld [vmem:[%s1107_s5 + $0x8] sm:$0xff]  ;;  %v244_v9 = vld [vmem:[%s1107_s5 + $0x10] sm:$0xff] }
  0x38   :  { %657 = vmatpush3.msra.mxu0 %v85_v4  ;;  %v242_v7 = vld [vmem:[%s1107_s5] sm:$0xff]  ;;  %v245_v11 = vld [vmem:[%s1107_s5 + $0x18] sm:$0xff]  ;;  %v83_v12 = vld [vmem:[#allocation2 + $0x10] sm:$0xff] }
  0x39   :  { %659 = vmatmul.mubr.msk.f32.vlgmr.msra.gmra.mrb[0].mxu0 %vm86_vm1, %v84_v6  ;;  %749 = vmatprep.subr.bf16.mxu0 %v884_v0  ;;  %v750_v10 = vpack.c.bf16 %v243_v8, %v242_v7  ;;  %v80_v13 = vld [vmem:[%s1102_s0] sm:$0xff]  ;;  %v753_v14 = vpack.c.bf16 %v245_v11, %v244_v9  ;;  %v247_v16 = vld [vmem:[%s1107_s5 + $0x28] sm:$0xff]  ;;  %v248_v18 = vld [vmem:[%s1107_s5 + $0x30] sm:$0xff] }
  0x3a   :  { %748 = vmatpush3.bf16.msra.mxu1 %v747_v5  ;;  %686 = vmatprep.mubr.msk.f32.mxu0 %vm886_vm0, %v885_v1  ;;  %v246_v15 = vld [vmem:[%s1107_s5 + $0x20] sm:$0xff]  ;;  %v249_v19 = vld [vmem:[%s1107_s5 + $0x38] sm:$0xff]  ;;  %v419_v33 = vld [vmem:[#allocation6 + $0x8] sm:$0xff] }
  0x3b   :  { %665 = vmatprep.subr.mxu1 %v885_v1  ;;  %751 = vmatpush3.bf16.msra.mxu0 %v750_v10  ;;  %v756_v17 = vpack.c.bf16 %v247_v16, %v246_v15  ;;  %v759_v20 = vpack.c.bf16 %v249_v19, %v248_v18  ;;  %v605_v24 = vld [vmem:[%s1106_s4] ss:$0 sm:$0xff]  ;;  %v420_v35 = vld [vmem:[#allocation6 + $0x10] sm:$0xff]  ;;  %v421_v36 = vld [vmem:[#allocation6 + $0x18] sm:$0xff] }
  0x3c   :  { %752 = vmatprep.subr.bf16.mxu0 %v884_v0  ;;  %v418_v32 = vld [vmem:[#allocation6] sm:$0xff]  ;;  %v777_v37 = vpack.c.bf16 %v421_v36, %v420_v35  ;;  %v423_v39 = vld [vmem:[#allocation6 + $0x28] sm:$0xff]  ;;  %v424_v41 = vld [vmem:[#allocation6 + $0x30] sm:$0xff] }
  0x3d   :  { %v774_v34 = vpack.c.bf16 %v419_v33, %v418_v32  ;;  %v422_v38 = vld [vmem:[#allocation6 + $0x20] sm:$0xff]  ;;  %v425_v42 = vld [vmem:[#allocation6 + $0x38] sm:$0xff]  ;;  %v508_v45 = vld [vmem:[%s1112_s10 + $0x8] sm:$0xff] }
  0x3e   :  { %666 = vmatpush3.msra.mxu1 %v83_v12  ;;  %v780_v40 = vpack.c.bf16 %v423_v39, %v422_v38  ;;  %v783_v43 = vpack.c.bf16 %v425_v42, %v424_v41  ;;  %v507_v44 = vld [vmem:[%s1112_s10] sm:$0xff]  ;;  %v509_v46 = vld [vmem:[%s1112_s10 + $0x10] sm:$0xff]  ;;  %v510_v48 = vld [vmem:[%s1112_s10 + $0x18] sm:$0xff] }
  0x3f   :  { %668 = vmatmul.mubr.msk.f32.vlgmr.msra.gmra.mrb[0].mxu1 %vm160_vm2, %v80_v13  ;;  %761 = vmatprep.subr.bf16.mxu1 %v884_v0  ;;  %v786_v47 = vpack.c.bf16 %v508_v45, %v507_v44  ;;  %v789_v49 = vpack.c.bf16 %v510_v48, %v509_v46  ;;  %v511_v50 = vld [vmem:[%s1112_s10 + $0x20] sm:$0xff]  ;;  %v512_v51 = vld [vmem:[%s1112_s10 + $0x28] sm:$0xff]  ;;  %v513_v63 = vld [vmem:[%s1112_s10 + $0x30] sm:$0xff] }
  0x40   :  { %754 = vmatpush3.bf16.msra.mxu0 %v753_v14  ;;  %763 = vmatpush3.bf16.msra.mxu1 %v750_v10  ;;  %v792_v52 = vpack.c.bf16 %v512_v51, %v511_v50  ;;  %v608_v56 = vld [vmem:[%s1108_s6] ss:$0 sm:$0xff] }
  0x41   :  { %755 = vmatprep.subr.bf16.mxu0 %v884_v0  ;;  %764 = vmatprep.subr.bf16.mxu1 %v884_v0  ;;  %v609_v59 = vld [vmem:[%s1109_s7] ss:$0 sm:$0xff] }
  0x42   :  { %705 = vmatprep.mubr.msk.f32.mxu1 %vm886_vm0, %v885_v1  ;;  %v610_v2 = vld [vmem:[%s1111_s9] ss:$0 sm:$0xff] }
  0x43   :  { %v612_v7 = vld [vmem:[%s1113_s11] ss:$0 sm:$0xff] }
  0x44   :  { %757 = vmatpush3.bf16.msra.mxu0 %v756_v17  ;;  %766 = vmatpush3.bf16.msra.mxu1 %v753_v14 }
  0x45   :  { %758 = vmatprep.subr.bf16.mxu0 %v884_v0  ;;  %767 = vmatprep.subr.bf16.mxu1 %v884_v0 }
  0x48   :  { %769 = vmatpush3.bf16.msra.mxu1 %v756_v17  ;;  %760 = vmatpush3.bf16.msra.mxu0 %v759_v20 }
  0x49   :  { %770 = vmatprep.subr.bf16.mxu1 %v884_v0  ;;  %773 = vmatprep.subr.bf16.mxu0 %v884_v0 }
  0x4c   :  { %772 = vmatpush3.bf16.msra.mxu1 %v759_v20 }
  0x4d   :  { %785 = vmatprep.subr.bf16.mxu1 %v884_v0 }
 0x10c   :  { %v156_v21 = vpop.f32.mrb[0].mxu0 }
 0x10d   :  { %v660_v22 = vpop.f32.mrb[1].mxu0 }
 0x112   :  { %v230_v23 = vpop.f32.mrb[0].mxu1 }
 0x113   :  { %v231_v25 = vadd.f32 %v230_v23, %v156_v21  ;;  %v669_v26 = vpop.f32.mrb[1].mxu1 }
 0x115   :  { %v241_v27 = vadd.f32 %v605_v24, %v231_v25 }
 0x117   :  { %687 = vmatmul.mubr.msk.f32.vlgmr.msra.gmra.mrb[2].mxu0 %vm250_vm3, %v241_v27 }
 0x118   :  { %724 = vmatprep.mubr.msk.f32.mxu0 %vm886_vm0, %v885_v1  ;;  %775 = vmatpush3.bf16.msra.mxu0 %v774_v34 }
 0x119   :  { %776 = vmatprep.subr.bf16.mxu0 %v884_v0 }
 0x11c   :  { %778 = vmatpush3.bf16.msra.mxu0 %v777_v37 }
 0x11d   :  { %779 = vmatprep.subr.bf16.mxu0 %v884_v0 }
 0x120   :  { %781 = vmatpush3.bf16.msra.mxu0 %v780_v40 }
 0x121   :  { %782 = vmatprep.subr.bf16.mxu0 %v884_v0 }
 0x124   :  { %784 = vmatpush3.bf16.msra.mxu0 %v783_v43 }
 0x1ea   :  { %v320_v28 = vpop.f32.mrb[2].mxu0 }
 0x1eb   :  { %v324_v29 = vsub.f32 %v241_v27, %v320_v28  ;;  %v688_v30 = vpop.f32.mrb[3].mxu0 }
 0x1ed   :  { %v325_v31 = vmul.f32 %v324_v29, %v324_v29 }
 0x1ef   :  { %706 = vmatmul.mubr.msk.f32.vlgmr.msra.gmra.mrb[2].mxu1 %vm250_vm3, %v325_v31 }
 0x1f0   :  { %743 = vmatprep.mubr.msk.f32.mxu1 %vm886_vm0, %v885_v1  ;;  %787 = vmatpush3.bf16.msra.mxu1 %v786_v47 }
 0x1f1   :  { %788 = vmatprep.subr.bf16.mxu1 %v884_v0 }
 0x1f4   :  { %790 = vmatpush3.bf16.msra.mxu1 %v789_v49 }
 0x1f5   :  { %791 = vmatprep.subr.bf16.mxu1 %v884_v0 }
 0x1f8   :  { %793 = vmatpush3.bf16.msra.mxu1 %v792_v52 }
 0x1f9   :  { %794 = vmatprep.subr.bf16.mxu1 %v884_v0  ;;  %v514_v0 = vld [vmem:[%s1112_s10 + $0x38] sm:$0xff] }
 0x1fa   :  { %v795_v1 = vpack.c.bf16 %v514_v0, %v513_v63 }
 0x1fc   :  { %796 = vmatpush3.bf16.msra.mxu1 %v795_v1 }
 0x2c2   :  { %v396_v53 = vpop.f32.mrb[2].mxu1 }
 0x2c3   :  { %v397_v54 = vadd.f32 1e-05, %v396_v53  ;;  %v707_v55 = vpop.f32.mrb[3].mxu1 }
 0x2c5   :  { %805 = vrsqrt.f32 %v397_v54 }
 0x2cf   :  { %v806_v57 = vpop.eup %805 }
 0x2d0   :  { %v407_v58 = vmul.f32 %v806_v57, %v608_v56 }
 0x2d2   :  { %v408_v60 = vmul.f32 %v407_v58, %v324_v29 }
 0x2d4   :  { %v416_v61 = vadd.f32 %v609_v59, %v408_v60 }
 0x2d6   :  { %807 = vtanh.f32 %v416_v61 }
 0x2e0   :  { %v808_v62 = vpop.eup %807 }
 0x2e1   :  { %725 = vmatmul.mubr.msk.f32.vlgmr.msra.gmra.mrb[4].mxu0 %vm250_vm3, %v808_v62 }
 0x3b4   :  { %v502_v3 = vpop.f32.mrb[4].mxu0 }
 0x3b5   :  { %v503_v4 = vadd.f32 %v610_v2, %v502_v3  ;;  %v726_v5 = vpop.f32.mrb[5].mxu0 }
 0x3b7   :  { %v506_v6 = vmax.f32 %v503_v4, 0.0 }
 0x3b9   :  { %744 = vmatmul.mubr.msk.f32.vlgmr.msra.gmra.mrb[4].mxu1 %vm250_vm3, %v506_v6 }
 0x48c   :  { %v591_v8 = vpop.f32.mrb[4].mxu1 }
 0x48d   :  { %v592_v9 = vadd.f32 %v612_v7, %v591_v8  ;;  %v745_v10 = vpop.f32.mrb[5].mxu1 }
 0x48f   :  { %596 = vst.msk [vmem:[%s1114_s12] sm:$0xff] %vm595_vm4, %v592_v9 }
 0x490   :  { %601 = vsyncpa [#allocation3], 1 }
 0x491   :  { %602 = vsyncpa [#allocation5], 1 }

</bundles_post_ra>
